<compile_context>
chip_gen: v7x
topology: tpu7x:2x2x1
jax: 0.10.0
libtpu: 0.0.40
codegen_flags: <defaults>
</compile_context>

<pallas_src>
import jax
import jax.numpy as jnp
import numpy as np
from jax import lax
from jax.experimental import pallas as pl
from jax.experimental.pallas import tpu as pltpu

# ------------------------- small shapes consistent with the module ----------
N = 2            # batch
C = 7            # channel
KH = 4           # kernel_size[0] == input height -> conv1 collapses H to 1
W = 24           # window_size
F = 8            # nb_filter
KW1 = 10         # kernel_size[1]
KW2 = 10         # layer2 conv kernel width
POOL = 3         # pool_size[1]
HID = 32         # hidden_size
NC = 2           # num_classes
EPS = 1e-5

OW1 = W - KW1 + 1        # 15   (out1_size)
MP1 = OW1 - POOL + 1     # 13   (maxpool_size)
OW2 = MP1 - KW2 + 1      # 4    (out2_size)
MP2 = OW2 - POOL + 1     # 2    (maxpool2_size)  -> fc1 in = MP2 * F = 16
CKH = C * KH             # 28
K1 = KW1 * CKH           # 280  (conv1 im2col contraction)
K2 = KW2 * F             # 80   (conv2 im2col contraction)


def cnn_kernel(xi_ref, w1_ref, s1_ref, b1_ref, w2_ref, s2_ref, b2_ref,
               fc1w_ref, fc1b_ref, fc2w_ref, fc2b_ref, out_ref):
    # ---- layer1: Conv2d(C->F,(KH,KW1)) + BN(folded) + ReLU -----------------
    # single im2col matmul for the whole batch: (N*OW1, K1) x (K1, F)
    h1 = jnp.dot(xi_ref[...], w1_ref[...], preferred_element_type=jnp.float32)
    h1 = jnp.maximum(h1 * s1_ref[...] + b1_ref[...], 0.0)          # (N*OW1, F)

    # ---- pool1 + conv2 im2col (per-sample static unroll, XLU/VPU only) -----
    x2_rows = []
    for n in range(N):
        h1n = h1[n * OW1:(n + 1) * OW1, :]                          # (OW1, F)
        p1n = jnp.maximum(jnp.maximum(h1n[0:MP1, :], h1n[1:MP1 + 1, :]),
                          h1n[2:MP1 + 2, :])                        # (MP1, F)
        x2_rows.append(jnp.concatenate(
            [p1n[kw:kw + OW2, :] for kw in range(KW2)], axis=1))    # (OW2, K2)
    x2 = jnp.concatenate(x2_rows, axis=0)                           # (N*OW2, K2)

    # ---- layer2: Conv2d(F->F,(1,KW2)) + BN + ReLU --------------------------
    h2 = jnp.dot(x2, w2_ref[...], preferred_element_type=jnp.float32)
    h2 = jnp.maximum(h2 * s2_ref[...] + b2_ref[...], 0.0)           # (N*OW2, F)

    # ---- pool2 + flatten (w-major, f-minor to match packed fc1 weight) -----
    flat_rows = []
    for n in range(N):
        h2n = h2[n * OW2:(n + 1) * OW2, :]                          # (OW2, F)
        p2n = jnp.maximum(jnp.maximum(h2n[0:MP2, :], h2n[1:MP2 + 1, :]),
                          h2n[2:MP2 + 2, :])                        # (MP2, F)
        flat_rows.append(jnp.concatenate(
            [p2n[w:w + 1, :] for w in range(MP2)], axis=1))         # (1, MP2*F)
    z = jnp.concatenate(flat_rows, axis=0)                          # (N, MP2*F)

    # ---- (dropout = identity) + fc1 + ReLU, fc2 + sigmoid ------------------
    z1 = jnp.maximum(
        jnp.dot(z, fc1w_ref[...], preferred_element_type=jnp.float32)
        + fc1b_ref[...], 0.0)                                       # (N, HID)
    z2 = jnp.dot(z1, fc2w_ref[...],
                 preferred_element_type=jnp.float32) + fc2b_ref[...]
    out_ref[...] = 1.0 / (1.0 + jnp.exp(-z2))                       # (N, NC)


def prepare_params(p):
    """One-time parameter prep (off the per-call path): fold BN, pack weights."""
    s1 = p['g1'] / jnp.sqrt(p['rv1'] + EPS)
    b1 = (p['cb1'] - p['rm1']) * s1 + p['be1']
    s2 = p['g2'] / jnp.sqrt(p['rv2'] + EPS)
    b2 = (p['cb2'] - p['rm2']) * s2 + p['be2']
    # conv1 weight -> (K1, F); column index = kw*CKH + c*KH + h
    w1 = jnp.transpose(p['w1'], (3, 1, 2, 0)).reshape(K1, F)
    # conv2 weight -> (K2, F); row index = kw*F + f_in
    w2 = jnp.transpose(p['w2'][:, :, 0, :], (2, 1, 0)).reshape(K2, F)
    # fc1 weight -> (MP2*F, HID) matching in-kernel (w-major, f-minor) flatten
    fc1w = jnp.transpose(p['fc1w'].reshape(HID, F, MP2), (2, 1, 0)).reshape(MP2 * F, HID)
    fc2w = p['fc2w'].T                                              # (HID, NC)
    return dict(w1=w1, s1=s1.reshape(1, F), b1=b1.reshape(1, F),
                w2=w2, s2=s2.reshape(1, F), b2=b2.reshape(1, F),
                fc1w=fc1w, fc1b=p['fc1b'].reshape(1, HID),
                fc2w=fc2w, fc2b=p['fc2b'].reshape(1, NC))


@jax.jit
def cnn_forward(x, pp):
    # Per-call work: only the activation im2col (pure XLA, tiny), then one
    # grid-less pallas_call with whole arrays resident in VMEM (<100 KB).
    x_t = jnp.transpose(x, (0, 3, 1, 2)).reshape(N, W, CKH)         # (N, W, C*KH)
    xi = jnp.concatenate([x_t[:, kw:kw + OW1, :] for kw in range(KW1)],
                         axis=2).reshape(N * OW1, K1)               # (N*OW1, K1)

    vmem = pl.BlockSpec(memory_space=pltpu.MemorySpace.VMEM)
    return pl.pallas_call(
        cnn_kernel,
        out_shape=jax.ShapeDtypeStruct((N, NC), jnp.float32),
        in_specs=[vmem] * 11,
        out_specs=vmem,
    )(xi, pp['w1'], pp['s1'], pp['b1'], pp['w2'], pp['s2'], pp['b2'],
      pp['fc1w'], pp['fc1b'], pp['fc2w'], pp['fc2b'])


def reference(x, p):
    """Independent pure-JAX reference matching the PyTorch forward (eval mode)."""
    y = lax.conv_general_dilated(x, p['w1'], (1, 1), 'VALID',
                                 dimension_numbers=('NCHW', 'OIHW', 'NCHW'))
    y = y + p['cb1'][None, :, None, None]
    y = ((y - p['rm1'][None, :, None, None])
         / jnp.sqrt(p['rv1'] + EPS)[None, :, None, None]
         * p['g1'][None, :, None, None] + p['be1'][None, :, None, None])
    y = jnp.maximum(y, 0.0)
    y = lax.reduce_window(y, -jnp.inf, lax.max, (1, 1, 1, POOL), (1, 1, 1, 1), 'VALID')
    y = lax.conv_general_dilated(y, p['w2'], (1, 1), 'VALID',
                                 dimension_numbers=('NCHW', 'OIHW', 'NCHW'))
    y = y + p['cb2'][None, :, None, None]
    y = ((y - p['rm2'][None, :, None, None])
         / jnp.sqrt(p['rv2'] + EPS)[None, :, None, None]
         * p['g2'][None, :, None, None] + p['be2'][None, :, None, None])
    y = jnp.maximum(y, 0.0)
    y = lax.reduce_window(y, -jnp.inf, lax.max, (1, 1, 1, POOL), (1, 1, 1, 1), 'VALID')
    y = y.reshape(N, -1)                              # (N, F*MP2), PyTorch view order
    y = y @ p['fc1w'].T + p['fc1b']
    y = jnp.maximum(y, 0.0)
    y = y @ p['fc2w'].T + p['fc2b']
    return jax.nn.sigmoid(y)


if __name__ == "__main__":
    ks = jax.random.split(jax.random.PRNGKey(0), 16)
    p = {
        'w1':  jax.random.normal(ks[0], (F, C, KH, KW1), jnp.float32) * 0.1,
        'cb1': jax.random.normal(ks[1], (F,), jnp.float32) * 0.1,
        'g1':  1.0 + jax.random.normal(ks[2], (F,), jnp.float32) * 0.1,
        'be1': jax.random.normal(ks[3], (F,), jnp.float32) * 0.1,
        'rm1': jax.random.normal(ks[4], (F,), jnp.float32) * 0.1,
        'rv1': 1.0 + jax.random.uniform(ks[5], (F,), jnp.float32) * 0.5,
        'w2':  jax.random.normal(ks[6], (F, F, 1, KW2), jnp.float32) * 0.1,
        'cb2': jax.random.normal(ks[7], (F,), jnp.float32) * 0.1,
        'g2':  1.0 + jax.random.normal(ks[8], (F,), jnp.float32) * 0.1,
        'be2': jax.random.normal(ks[9], (F,), jnp.float32) * 0.1,
        'rm2': jax.random.normal(ks[10], (F,), jnp.float32) * 0.1,
        'rv2': 1.0 + jax.random.uniform(ks[11], (F,), jnp.float32) * 0.5,
        'fc1w': jax.random.normal(ks[12], (HID, F * MP2), jnp.float32) * 0.1,
        'fc1b': jax.random.normal(ks[13], (HID,), jnp.float32) * 0.1,
        'fc2w': jax.random.normal(ks[14], (NC, HID), jnp.float32) * 0.1,
        'fc2b': jax.random.normal(ks[15], (NC,), jnp.float32) * 0.1,
    }
    x = jax.random.normal(jax.random.PRNGKey(1), (N, C, KH, W), jnp.float32)

    pp = jax.tree_util.tree_map(jax.block_until_ready, prepare_params(p))  # one-time
    out = jax.block_until_ready(cnn_forward(x, pp))
    ref = reference(x, p)
    np.testing.assert_allclose(np.asarray(out), np.asarray(ref),
                               rtol=1e-4, atol=1e-5)
    print("KERNEL_OK")
</pallas_src>

<mosaic_0001>
module attributes {stable_mosaic.version = 11 : i64} {
  func.func @cnn_kernel(%arg0: memref<30x280xf32, #tpu.memory_space<vmem>>, %arg1: memref<280x8xf32, #tpu.memory_space<vmem>>, %arg2: memref<1x8xf32, #tpu.memory_space<vmem>>, %arg3: memref<1x8xf32, #tpu.memory_space<vmem>>, %arg4: memref<80x8xf32, #tpu.memory_space<vmem>>, %arg5: memref<1x8xf32, #tpu.memory_space<vmem>>, %arg6: memref<1x8xf32, #tpu.memory_space<vmem>>, %arg7: memref<16x32xf32, #tpu.memory_space<vmem>>, %arg8: memref<1x32xf32, #tpu.memory_space<vmem>>, %arg9: memref<32x2xf32, #tpu.memory_space<vmem>>, %arg10: memref<1x2xf32, #tpu.memory_space<vmem>>, %arg11: memref<2x2xf32, #tpu.memory_space<vmem>>) attributes {dimension_semantics = [], scalar_prefetch = 0 : i64, scratch_operands = 0 : i64, tpu.core_type = #tpu.core_type<tc>} {
    %c0 = arith.constant 0 : index
    %c0_0 = arith.constant 0 : index
    %0 = vector.load %arg0[%c0, %c0_0] : memref<30x280xf32, #tpu.memory_space<vmem>>, vector<30x280xf32>
    %c0_1 = arith.constant 0 : index
    %c0_2 = arith.constant 0 : index
    %1 = vector.load %arg1[%c0_1, %c0_2] : memref<280x8xf32, #tpu.memory_space<vmem>>, vector<280x8xf32>
    %cst = arith.constant dense<0.000000e+00> : vector<30x8xf32>
    %2 = tpu.matmul %0, %1, %cst {dimension_numbers = #tpu.dot_dimension_numbers<[1], [0], [0], [1], [0, 0, 1, 1], [], []>} : vector<30x280xf32>, vector<280x8xf32>, vector<30x8xf32> -> vector<30x8xf32>
    %c0_3 = arith.constant 0 : index
    %c0_4 = arith.constant 0 : index
    %3 = vector.load %arg2[%c0_3, %c0_4] : memref<1x8xf32, #tpu.memory_space<vmem>>, vector<1x8xf32>
    %4 = vector.broadcast %3 : vector<1x8xf32> to vector<30x8xf32>
    %5 = arith.mulf %2, %4 : vector<30x8xf32>
    %c0_5 = arith.constant 0 : index
    %c0_6 = arith.constant 0 : index
    %6 = vector.load %arg3[%c0_5, %c0_6] : memref<1x8xf32, #tpu.memory_space<vmem>>, vector<1x8xf32>
    %7 = vector.broadcast %6 : vector<1x8xf32> to vector<30x8xf32>
    %8 = arith.addf %5, %7 : vector<30x8xf32>
    %cst_7 = arith.constant 0.000000e+00 : f32
    %9 = vector.broadcast %cst_7 : f32 to vector<30x8xf32>
    %10 = arith.maximumf %8, %9 : vector<30x8xf32>
    %11 = vector.extract_strided_slice %10 {offsets = [0, 0], sizes = [15, 8], strides = [1, 1]} : vector<30x8xf32> to vector<15x8xf32>
    %12 = vector.extract_strided_slice %11 {offsets = [0, 0], sizes = [13, 8], strides = [1, 1]} : vector<15x8xf32> to vector<13x8xf32>
    %13 = vector.extract_strided_slice %11 {offsets = [1, 0], sizes = [13, 8], strides = [1, 1]} : vector<15x8xf32> to vector<13x8xf32>
    %14 = arith.maximumf %12, %13 : vector<13x8xf32>
    %15 = vector.extract_strided_slice %11 {offsets = [2, 0], sizes = [13, 8], strides = [1, 1]} : vector<15x8xf32> to vector<13x8xf32>
    %16 = arith.maximumf %14, %15 : vector<13x8xf32>
    %17 = vector.extract_strided_slice %16 {offsets = [0, 0], sizes = [4, 8], strides = [1, 1]} : vector<13x8xf32> to vector<4x8xf32>
    %18 = vector.extract_strided_slice %16 {offsets = [1, 0], sizes = [4, 8], strides = [1, 1]} : vector<13x8xf32> to vector<4x8xf32>
    %19 = vector.extract_strided_slice %16 {offsets = [2, 0], sizes = [4, 8], strides = [1, 1]} : vector<13x8xf32> to vector<4x8xf32>
    %20 = vector.extract_strided_slice %16 {offsets = [3, 0], sizes = [4, 8], strides = [1, 1]} : vector<13x8xf32> to vector<4x8xf32>
    %21 = vector.extract_strided_slice %16 {offsets = [4, 0], sizes = [4, 8], strides = [1, 1]} : vector<13x8xf32> to vector<4x8xf32>
    %22 = vector.extract_strided_slice %16 {offsets = [5, 0], sizes = [4, 8], strides = [1, 1]} : vector<13x8xf32> to vector<4x8xf32>
    %23 = vector.extract_strided_slice %16 {offsets = [6, 0], sizes = [4, 8], strides = [1, 1]} : vector<13x8xf32> to vector<4x8xf32>
    %24 = vector.extract_strided_slice %16 {offsets = [7, 0], sizes = [4, 8], strides = [1, 1]} : vector<13x8xf32> to vector<4x8xf32>
    %25 = vector.extract_strided_slice %16 {offsets = [8, 0], sizes = [4, 8], strides = [1, 1]} : vector<13x8xf32> to vector<4x8xf32>
    %26 = vector.extract_strided_slice %16 {offsets = [9, 0], sizes = [4, 8], strides = [1, 1]} : vector<13x8xf32> to vector<4x8xf32>
    %27 = tpu.concatenate %17, %18, %19, %20, %21, %22, %23, %24, %25, %26 in 1 : vector<4x8xf32>, vector<4x8xf32>, vector<4x8xf32>, vector<4x8xf32>, vector<4x8xf32>, vector<4x8xf32>, vector<4x8xf32>, vector<4x8xf32>, vector<4x8xf32>, vector<4x8xf32> -> vector<4x80xf32>
    %28 = vector.extract_strided_slice %10 {offsets = [15, 0], sizes = [15, 8], strides = [1, 1]} : vector<30x8xf32> to vector<15x8xf32>
    %29 = vector.extract_strided_slice %28 {offsets = [0, 0], sizes = [13, 8], strides = [1, 1]} : vector<15x8xf32> to vector<13x8xf32>
    %30 = vector.extract_strided_slice %28 {offsets = [1, 0], sizes = [13, 8], strides = [1, 1]} : vector<15x8xf32> to vector<13x8xf32>
    %31 = arith.maximumf %29, %30 : vector<13x8xf32>
    %32 = vector.extract_strided_slice %28 {offsets = [2, 0], sizes = [13, 8], strides = [1, 1]} : vector<15x8xf32> to vector<13x8xf32>
    %33 = arith.maximumf %31, %32 : vector<13x8xf32>
    %34 = vector.extract_strided_slice %33 {offsets = [0, 0], sizes = [4, 8], strides = [1, 1]} : vector<13x8xf32> to vector<4x8xf32>
    %35 = vector.extract_strided_slice %33 {offsets = [1, 0], sizes = [4, 8], strides = [1, 1]} : vector<13x8xf32> to vector<4x8xf32>
    %36 = vector.extract_strided_slice %33 {offsets = [2, 0], sizes = [4, 8], strides = [1, 1]} : vector<13x8xf32> to vector<4x8xf32>
    %37 = vector.extract_strided_slice %33 {offsets = [3, 0], sizes = [4, 8], strides = [1, 1]} : vector<13x8xf32> to vector<4x8xf32>
    %38 = vector.extract_strided_slice %33 {offsets = [4, 0], sizes = [4, 8], strides = [1, 1]} : vector<13x8xf32> to vector<4x8xf32>
    %39 = vector.extract_strided_slice %33 {offsets = [5, 0], sizes = [4, 8], strides = [1, 1]} : vector<13x8xf32> to vector<4x8xf32>
    %40 = vector.extract_strided_slice %33 {offsets = [6, 0], sizes = [4, 8], strides = [1, 1]} : vector<13x8xf32> to vector<4x8xf32>
    %41 = vector.extract_strided_slice %33 {offsets = [7, 0], sizes = [4, 8], strides = [1, 1]} : vector<13x8xf32> to vector<4x8xf32>
    %42 = vector.extract_strided_slice %33 {offsets = [8, 0], sizes = [4, 8], strides = [1, 1]} : vector<13x8xf32> to vector<4x8xf32>
    %43 = vector.extract_strided_slice %33 {offsets = [9, 0], sizes = [4, 8], strides = [1, 1]} : vector<13x8xf32> to vector<4x8xf32>
    %44 = tpu.concatenate %34, %35, %36, %37, %38, %39, %40, %41, %42, %43 in 1 : vector<4x8xf32>, vector<4x8xf32>, vector<4x8xf32>, vector<4x8xf32>, vector<4x8xf32>, vector<4x8xf32>, vector<4x8xf32>, vector<4x8xf32>, vector<4x8xf32>, vector<4x8xf32> -> vector<4x80xf32>
    %45 = tpu.concatenate %27, %44 in 0 : vector<4x80xf32>, vector<4x80xf32> -> vector<8x80xf32>
    %c0_8 = arith.constant 0 : index
    %c0_9 = arith.constant 0 : index
    %46 = vector.load %arg4[%c0_8, %c0_9] : memref<80x8xf32, #tpu.memory_space<vmem>>, vector<80x8xf32>
    %cst_10 = arith.constant dense<0.000000e+00> : vector<8x8xf32>
    %47 = tpu.matmul %45, %46, %cst_10 {dimension_numbers = #tpu.dot_dimension_numbers<[1], [0], [0], [1], [0, 0, 1, 1], [], []>} : vector<8x80xf32>, vector<80x8xf32>, vector<8x8xf32> -> vector<8x8xf32>
    %c0_11 = arith.constant 0 : index
    %c0_12 = arith.constant 0 : index
    %48 = vector.load %arg5[%c0_11, %c0_12] : memref<1x8xf32, #tpu.memory_space<vmem>>, vector<1x8xf32>
    %49 = vector.broadcast %48 : vector<1x8xf32> to vector<8x8xf32>
    %50 = arith.mulf %47, %49 : vector<8x8xf32>
    %c0_13 = arith.constant 0 : index
    %c0_14 = arith.constant 0 : index
    %51 = vector.load %arg6[%c0_13, %c0_14] : memref<1x8xf32, #tpu.memory_space<vmem>>, vector<1x8xf32>
    %52 = vector.broadcast %51 : vector<1x8xf32> to vector<8x8xf32>
    %53 = arith.addf %50, %52 : vector<8x8xf32>
    %cst_15 = arith.constant 0.000000e+00 : f32
    %54 = vector.broadcast %cst_15 : f32 to vector<8x8xf32>
    %55 = arith.maximumf %53, %54 : vector<8x8xf32>
    %56 = vector.extract_strided_slice %55 {offsets = [0, 0], sizes = [4, 8], strides = [1, 1]} : vector<8x8xf32> to vector<4x8xf32>
    %57 = vector.extract_strided_slice %56 {offsets = [0, 0], sizes = [2, 8], strides = [1, 1]} : vector<4x8xf32> to vector<2x8xf32>
    %58 = vector.extract_strided_slice %56 {offsets = [1, 0], sizes = [2, 8], strides = [1, 1]} : vector<4x8xf32> to vector<2x8xf32>
    %59 = arith.maximumf %57, %58 : vector<2x8xf32>
    %60 = vector.extract_strided_slice %56 {offsets = [2, 0], sizes = [2, 8], strides = [1, 1]} : vector<4x8xf32> to vector<2x8xf32>
    %61 = arith.maximumf %59, %60 : vector<2x8xf32>
    %62 = vector.extract_strided_slice %61 {offsets = [0, 0], sizes = [1, 8], strides = [1, 1]} : vector<2x8xf32> to vector<1x8xf32>
    %63 = vector.extract_strided_slice %61 {offsets = [1, 0], sizes = [1, 8], strides = [1, 1]} : vector<2x8xf32> to vector<1x8xf32>
    %64 = tpu.concatenate %62, %63 in 1 : vector<1x8xf32>, vector<1x8xf32> -> vector<1x16xf32>
    %65 = vector.extract_strided_slice %55 {offsets = [4, 0], sizes = [4, 8], strides = [1, 1]} : vector<8x8xf32> to vector<4x8xf32>
    %66 = vector.extract_strided_slice %65 {offsets = [0, 0], sizes = [2, 8], strides = [1, 1]} : vector<4x8xf32> to vector<2x8xf32>
    %67 = vector.extract_strided_slice %65 {offsets = [1, 0], sizes = [2, 8], strides = [1, 1]} : vector<4x8xf32> to vector<2x8xf32>
    %68 = arith.maximumf %66, %67 : vector<2x8xf32>
    %69 = vector.extract_strided_slice %65 {offsets = [2, 0], sizes = [2, 8], strides = [1, 1]} : vector<4x8xf32> to vector<2x8xf32>
    %70 = arith.maximumf %68, %69 : vector<2x8xf32>
    %71 = vector.extract_strided_slice %70 {offsets = [0, 0], sizes = [1, 8], strides = [1, 1]} : vector<2x8xf32> to vector<1x8xf32>
    %72 = vector.extract_strided_slice %70 {offsets = [1, 0], sizes = [1, 8], strides = [1, 1]} : vector<2x8xf32> to vector<1x8xf32>
    %73 = tpu.concatenate %71, %72 in 1 : vector<1x8xf32>, vector<1x8xf32> -> vector<1x16xf32>
    %74 = tpu.concatenate %64, %73 in 0 : vector<1x16xf32>, vector<1x16xf32> -> vector<2x16xf32>
    %c0_16 = arith.constant 0 : index
    %c0_17 = arith.constant 0 : index
    %75 = vector.load %arg7[%c0_16, %c0_17] : memref<16x32xf32, #tpu.memory_space<vmem>>, vector<16x32xf32>
    %cst_18 = arith.constant dense<0.000000e+00> : vector<2x32xf32>
    %76 = tpu.matmul %74, %75, %cst_18 {dimension_numbers = #tpu.dot_dimension_numbers<[1], [0], [0], [1], [0, 0, 1, 1], [], []>} : vector<2x16xf32>, vector<16x32xf32>, vector<2x32xf32> -> vector<2x32xf32>
    %c0_19 = arith.constant 0 : index
    %c0_20 = arith.constant 0 : index
    %77 = vector.load %arg8[%c0_19, %c0_20] : memref<1x32xf32, #tpu.memory_space<vmem>>, vector<1x32xf32>
    %78 = vector.broadcast %77 : vector<1x32xf32> to vector<2x32xf32>
    %79 = arith.addf %76, %78 : vector<2x32xf32>
    %cst_21 = arith.constant 0.000000e+00 : f32
    %80 = vector.broadcast %cst_21 : f32 to vector<2x32xf32>
    %81 = arith.maximumf %79, %80 : vector<2x32xf32>
    %c0_22 = arith.constant 0 : index
    %c0_23 = arith.constant 0 : index
    %82 = vector.load %arg9[%c0_22, %c0_23] : memref<32x2xf32, #tpu.memory_space<vmem>>, vector<32x2xf32>
    %cst_24 = arith.constant dense<0.000000e+00> : vector<2x2xf32>
    %83 = tpu.matmul %81, %82, %cst_24 {dimension_numbers = #tpu.dot_dimension_numbers<[1], [0], [0], [1], [0, 0, 1, 1], [], []>} : vector<2x32xf32>, vector<32x2xf32>, vector<2x2xf32> -> vector<2x2xf32>
    %c0_25 = arith.constant 0 : index
    %c0_26 = arith.constant 0 : index
    %84 = vector.load %arg10[%c0_25, %c0_26] : memref<1x2xf32, #tpu.memory_space<vmem>>, vector<1x2xf32>
    %85 = vector.broadcast %84 : vector<1x2xf32> to vector<2x2xf32>
    %86 = arith.addf %83, %85 : vector<2x2xf32>
    %cst_27 = arith.constant 0.000000e+00 : f32
    %87 = vector.broadcast %cst_27 : f32 to vector<2x2xf32>
    %88 = arith.subf %87, %86 : vector<2x2xf32>
    %89 = math.exp %88 : vector<2x2xf32>
    %cst_28 = arith.constant 1.000000e+00 : f32
    %90 = vector.broadcast %cst_28 : f32 to vector<2x2xf32>
    %91 = arith.addf %90, %89 : vector<2x2xf32>
    %cst_29 = arith.constant 1.000000e+00 : f32
    %92 = vector.broadcast %cst_29 : f32 to vector<2x2xf32>
    %93 = arith.divf %92, %91 : vector<2x2xf32>
    %c0_30 = arith.constant 0 : index
    %c0_31 = arith.constant 0 : index
    %94 = vector.load %arg11[%c0_30, %c0_31] : memref<2x2xf32, #tpu.memory_space<vmem>>, vector<2x2xf32>
    tpu.vector_store %arg11[%c0_30, %c0_31], %93 {strides = array<i32>} : memref<2x2xf32, #tpu.memory_space<vmem>>, vector<2x2xf32>,
    return
  }
}

</mosaic_0001>

<bundles_post_ra>
// kernel: cnn_forward.1
= control target key start
LH: loop header
LB: loop body
LE: loop exit
PB: predicated region body
PF: predicated region fallthrough
CT: control target
= control target key end

     0   :  { %vm86_vm0 = vcmask 195584   ;;  %s1410_s0 = inlined_call_operand.vmem [shape: f32[30,280], index: 0, kind: input, shape index: {}]   ;;  %s1411_s1 = inlined_call_operand.vmem [shape: f32[280,8], index: 1, kind: input, shape index: {}]   ;;  %s1412_s2 = inlined_call_operand.vmem [shape: f32[1,8], index: 2, kind: input, shape index: {}]   ;;  %s1413_s3 = inlined_call_operand.vmem [shape: f32[1,8], index: 3, kind: input, shape index: {}]   ;;  %s1414_s4 = inlined_call_operand.vmem [shape: f32[80,8], index: 4, kind: input, shape index: {}]   ;;  %s1415_s5 = inlined_call_operand.vmem [shape: f32[1,8], index: 5, kind: input, shape index: {}]   ;;  %s1416_s6 = inlined_call_operand.vmem [shape: f32[1,8], index: 6, kind: input, shape index: {}]   ;;  %s1417_s7 = inlined_call_operand.vmem [shape: f32[16,32], index: 7, kind: input, shape index: {}]   ;;  %s1418_s8 = inlined_call_operand.vmem [shape: f32[1,32], index: 8, kind: input, shape index: {}]   ;;  %s1419_s9 = inlined_call_operand.vmem [shape: f32[32,2], index: 9, kind: input, shape index: {}]   ;;  %s1420_s10 = inlined_call_operand.vmem [shape: f32[1,2], index: 10, kind: input, shape index: {}]   ;;  %s1421_s11 = inlined_call_operand.hbm [shape: f32[2,2], index: 11, kind: output, shape index: {}]  }
   0x1   :  { %v67_v0 = vld [vmem:[%s1411_s1 + $0x80] sm:$0xff]  ;;  %v68_v1 = vld [vmem:[%s1411_s1 + $0x88] sm:$0xff]  ;;  %v69_v5 = vld [vmem:[%s1411_s1 + $0x90] sm:$0xff] }
   0x2   :  { %v51_v2 = vld [vmem:[%s1411_s1] sm:$0xff]  ;;  %v916_v3 = vpack.c.bf16 %v68_v1, %v67_v0  ;;  %v52_v4 = vld [vmem:[%s1411_s1 + $0x8] sm:$0xff]  ;;  %v70_v6 = vld [vmem:[%s1411_s1 + $0x98] sm:$0xff] }
   0x3   :  { %v918_v7 = vpack.c.bf16 %v52_v4, %v51_v2  ;;  %v920_v8 = vpack.c.bf16 %v70_v6, %v69_v5  ;;  %v53_v9 = vld [vmem:[%s1411_s1 + $0x10] sm:$0xff]  ;;  %v54_v10 = vld [vmem:[%s1411_s1 + $0x18] sm:$0xff]  ;;  %v71_v11 = vld [vmem:[%s1411_s1 + $0xa0] sm:$0xff] }
   0x4   :  { %917 = vmatprep.subr.bf16.mxu0 %v916_v3  ;;  %v72_v12 = vld [vmem:[%s1411_s1 + $0xa8] sm:$0xff]  ;;  %v922_v13 = vpack.c.bf16 %v54_v10, %v53_v9  ;;  %v55_v15 = vld [vmem:[%s1411_s1 + $0x20] sm:$0xff]  ;;  %v73_v17 = vld [vmem:[%s1411_s1 + $0xb0] sm:$0xff] }
   0x5   :  { %919 = vmatpush3.bf16.msra.mxu0 %v918_v7  ;;  %v924_v14 = vpack.c.bf16 %v72_v12, %v71_v11  ;;  %v56_v16 = vld [vmem:[%s1411_s1 + $0x28] sm:$0xff]  ;;  %v74_v18 = vld [vmem:[%s1411_s1 + $0xb8] sm:$0xff]  ;;  %v57_v21 = vld [vmem:[%s1411_s1 + $0x30] sm:$0xff] }
   0x6   :  { %921 = vmatprep.subr.bf16.mxu0 %v920_v8  ;;  %v926_v19 = vpack.c.bf16 %v56_v16, %v55_v15  ;;  %v928_v20 = vpack.c.bf16 %v74_v18, %v73_v17  ;;  %v58_v22 = vld [vmem:[%s1411_s1 + $0x38] sm:$0xff]  ;;  %v75_v23 = vld [vmem:[%s1411_s1 + $0xc0] sm:$0xff]  ;;  %v76_v24 = vld [vmem:[%s1411_s1 + $0xc8] sm:$0xff] }
   0x7   :  { %v83_v25 = vld [vmem:[%s1411_s1 + $0x100] sm:$0xff]  ;;  %v84_v26 = vld [vmem:[%s1411_s1 + $0x108] sm:$0xff]  ;;  %v930_v29 = vpack.c.bf16 %v58_v22, %v57_v21  ;;  %v85_v30 = vld [vmem:[%s1411_s1 + $0x110] sm:$0xff]  ;;  %v932_v32 = vpack.c.bf16 %v76_v24, %v75_v23 }
   0x8   :  { %v948_v27 = vpack.c.bf16 %v84_v26, %v83_v25  ;;  %v40_v28 = vld [vmem:[%s1410_s0 + $0x8] sm:$0xff]  ;;  %v41_v31 = vld [vmem:[%s1410_s0 + $0x10] sm:$0xff]  ;;  %v59_v33 = vld [vmem:[%s1411_s1 + $0x40] sm:$0xff] }
   0x9   :  { %923 = vmatpush3.bf16.msra.mxu0 %v922_v13  ;;  %163 = vmatprep.mubr.f32.mxu0 %v40_v28  ;;  %v60_v34 = vld [vmem:[%s1411_s1 + $0x48] sm:$0xff]  ;;  %v77_v35 = vld [vmem:[%s1411_s1 + $0xd0] sm:$0xff]  ;;  %v78_v36 = vld [vmem:[%s1411_s1 + $0xd8] sm:$0xff] }
   0xa   :  { %925 = vmatprep.subr.bf16.mxu0 %v924_v14  ;;  %949 = vmatprep.subr.bf16.mxu1 %v948_v27 }
   0xb   :  { %951 = vmatpush3.bf16.msra.mxu1 %v948_v27  ;;  %869 = vmatprep.mubr.msk.f32.mxu1 %vm86_vm0, %v41_v31 }
   0xc   :  { %867 = vmatprep.subr.mxu1 %v85_v30 }
   0xd   :  { %927 = vmatpush3.bf16.msra.mxu0 %v926_v19 }
   0xe   :  { %929 = vmatprep.subr.bf16.mxu0 %v928_v20 }
   0xf   :  { %16 = vsyncpa [#allocation3], 0  ;;  %v934_v37 = vpack.c.bf16 %v60_v34, %v59_v33  ;;  %v44_v38 = vld [vmem:[%s1410_s0 + $0x28] sm:$0xff]  ;;  %v936_v39 = vpack.c.bf16 %v78_v36, %v77_v35  ;;  %v61_v40 = vld [vmem:[%s1411_s1 + $0x50] sm:$0xff]  ;;  %868 = vmatpush3.msra.mxu1 %v85_v30  ;;  %vm297_vm1 = vcmask 1046528   ;;  %vm305_vm2 = vcmask 1045504  }
  0x10   :  { %v62_v41 = vld [vmem:[%s1411_s1 + $0x58] sm:$0xff]  ;;  %v47_v42 = vld [vmem:[%s1410_s0 + $0x40] sm:$0xff]  ;;  %v80_v44 = vld [vmem:[%s1411_s1 + $0xe8] sm:$0xff]  ;;  %870 = vmatmul.mubr.msk.f32.vlgmr.msra.gmra.mrb[0].mxu1 %vm86_vm0, %v44_v38  ;;  %vm338_vm3 = vcmask 1041408   ;;  %s1020_s19 = smov 16   ;;  %s1021_s24 = smov 64  }
  0x11   :  { %931 = vmatpush3.bf16.msra.mxu0 %v930_v29  ;;  %v79_v43 = vld [vmem:[%s1411_s1 + $0xe0] sm:$0xff]  ;;  %v938_v45 = vpack.c.bf16 %v62_v41, %v61_v40  ;;  %872 = vmatprep.mubr.msk.f32.mxu1 %vm86_vm0, %v47_v42  ;;  %v50_v46 = vld [vmem:[%s1410_s0 + $0x58] sm:$0x3f]  ;;  %v64_v49 = vld [vmem:[%s1411_s1 + $0x68] sm:$0xff]  ;;  %s1022_s25 = smov 24   ;;  %vm331_vm4 = vcmask 1042432  }
  0x12   :  { %933 = vmatprep.subr.bf16.mxu0 %v932_v32  ;;  %v940_v47 = vpack.c.bf16 %v80_v44, %v79_v43  ;;  %v63_v48 = vld [vmem:[%s1411_s1 + $0x60] sm:$0xff]  ;;  %v81_v50 = vld [vmem:[%s1411_s1 + $0xf0] sm:$0xff]  ;;  %v82_v51 = vld [vmem:[%s1411_s1 + $0xf8] sm:$0xff]  ;;  %s1024_s29 = smov 40   ;;  %vm1026_vm5 = vmmov 0   ;;  %vm345_vm6 = vcmask 1040384  }
  0x13   :  { %v942_v52 = vpack.c.bf16 %v64_v49, %v63_v48  ;;  %v944_v53 = vpack.c.bf16 %v82_v51, %v81_v50  ;;  %v65_v54 = vld [vmem:[%s1411_s1 + $0x70] sm:$0xff]  ;;  %v66_v55 = vld [vmem:[%s1411_s1 + $0x78] sm:$0xff]  ;;  %v39_v57 = vld [vmem:[%s1410_s0] sm:$0xff]  ;;  %vm359_vm7 = vcmask 64512   ;;  %vm361_vm8 = vcmask 130048  }
  0x14   :  { %873 = vmatmul.mubr.msk.f32.gmra.mrb[2].mxu1 %vm86_vm0, %v50_v46  ;;  %v946_v56 = vpack.c.bf16 %v66_v55, %v65_v54  ;;  %v43_v58 = vld [vmem:[%s1410_s0 + $0x20] sm:$0xff]  ;;  %v42_v59 = vld [vmem:[%s1410_s0 + $0x18] sm:$0xff]  ;;  %v45_v61 = vld [vmem:[%s1410_s0 + $0x30] sm:$0xff]  ;;  %vm364_vm9 = vcmask 261120   ;;  %vm366_vm10 = vcmask 326656   ;;  %vm370_vm11 = vcmask 457728  }
  0x15   :  { %935 = vmatpush3.bf16.msra.mxu0 %v934_v37  ;;  %v46_v60 = vld [vmem:[%s1410_s0 + $0x38] sm:$0xff]  ;;  %v49_v62 = vld [vmem:[%s1410_s0 + $0x50] sm:$0x3f]  ;;  %v48_v63 = vld [vmem:[%s1410_s0 + $0x48] sm:$0x3f]  ;;  %s1017_s0 = smov 32  }
  0x16   :  { %937 = vmatprep.subr.bf16.mxu0 %v936_v39  ;;  %v784_v7 = vld [vmem:[%s1412_s2] ss:$0 sm:$0xff]  ;;  %s1018_s2 = smov 8   ;;  %vm368_vm12 = vcmask 392192   ;;  %vm372_vm13 = vcmask 523264   ;;  %vm374_vm14 = vcmask 588800  }
  0x17   :  { %v785_v10 = vld [vmem:[%s1413_s3] ss:$0 sm:$0xff]  ;;  %s1019_s3 = smov 48   ;;  %vm466_vm15 = vcmask 1044480  }
  0x19   :  { %939 = vmatpush3.bf16.msra.mxu0 %v938_v45 }
  0x1a   :  { %941 = vmatprep.subr.bf16.mxu0 %v940_v47 }
  0x1d   :  { %943 = vmatpush3.bf16.msra.mxu0 %v942_v52 }
  0x1e   :  { %945 = vmatprep.subr.bf16.mxu0 %v944_v53 }
  0x21   :  { %947 = vmatpush3.bf16.msra.mxu0 %v946_v56 }
  0x24   :  { %164 = vmatmul.mubr.f32.vlgmr.msra.gmra.mrb[0].mxu0 %v39_v57 }
  0x25   :  { %168 = vmatprep.mubr.f32.mxu0 %v43_v58 }
  0x28   :  { %169 = vmatmul.mubr.f32.gmra.mrb[2].mxu0 %v42_v59 }
  0x29   :  { %173 = vmatprep.mubr.f32.mxu0 %v46_v60 }
  0x2c   :  { %174 = vmatmul.mubr.f32.gmra.mrb[4].mxu0 %v45_v61 }
  0x2d   :  { %178 = vmatprep.mubr.f32.mxu0 %v49_v62 }
  0x30   :  { %179 = vmatmul.mubr.f32.gmra.mrb[6].mxu0 %v48_v63  ;;  %v473_v63 = vld [vmem:[%s1414_s4] sm:$0xff] }
  0xe3   :  { %v871_v0 = vpop.f32.mrb[0].mxu1 }
  0xe4   :  { %v250_v1 = vpop.f32.mrb[1].mxu1 }
  0xe7   :  { %v874_v2 = vpop.f32.mrb[2].mxu1 }
  0xe8   :  { %v260_v3 = vpop.f32.mrb[3].mxu1 }
  0xf7   :  { %v825_v4 = vpop.f32.mrb[0].mxu0 }
  0xf8   :  { %v826_v5 = vpop.f32.mrb[1].mxu0 }
  0xf9   :  { %v827_v6 = vadd.f32 %v826_v5, %v825_v4 }
  0xfb   :  { %v251_v8 = vadd.f32 %v827_v6, %v250_v1  ;;  %v828_v9 = vpop.f32.mrb[2].mxu0  ;;  %v475_v6 = vld [vmem:[%s1414_s4 + $0x10] sm:$0xff] }
  0xfc   :  { %v829_v11 = vpop.f32.mrb[3].mxu0 }
  0xfd   :  { %v276_v12 = vmul.f32 %v784_v7, %v251_v8  ;;  %v830_v13 = vadd.f32 %v829_v11, %v828_v9  ;;  %v477_v11 = vld [vmem:[%s1414_s4 + $0x20] sm:$0xff] }
  0xff   :  { %v287_v14 = vadd.f32 %v785_v10, %v276_v12  ;;  %v256_v15 = vadd.f32 %v871_v0, %v830_v13  ;;  %v831_v16 = vpop.f32.mrb[4].mxu0  ;;  %v474_v0 = vld [vmem:[%s1414_s4 + $0x8] sm:$0xff] }
 0x100   :  { %v832_v17 = vpop.f32.mrb[5].mxu0  ;;  %v953_v1 = vpack.c.bf16 %v474_v0, %v473_v63  ;;  %v478_v12 = vld [vmem:[%s1414_s4 + $0x28] sm:$0xff] }
 0x101   :  { %v277_v18 = vmul.f32 %v784_v7, %v256_v15  ;;  %v833_v19 = vadd.f32 %v832_v17, %v831_v16  ;;  %v291_v20 = vmax.f32 %v287_v14, 0.0  ;;  %v959_v13 = vpack.c.bf16 %v478_v12, %v477_v11 }
 0x103   :  { %v288_v21 = vadd.f32 %v785_v10, %v277_v18  ;;  %v261_v22 = vadd.f32 %v833_v19, %v260_v3  ;;  %v834_v23 = vpop.f32.mrb[6].mxu0  ;;  %v298_v28 = vrot.slane %v291_v20, 1  ;;  %v306_v33 = vrot.slane %v291_v20, 2  ;;  %v479_v18 = vld [vmem:[%s1414_s4 + $0x30] sm:$0xff]  ;;  %v480_v19 = vld [vmem:[%s1414_s4 + $0x38] sm:$0xff] }
 0x104   :  { %v835_v24 = vpop.f32.mrb[7].mxu0 }
 0x105   :  { %v292_v25 = vmax.f32 %v288_v21, 0.0  ;;  %v278_v26 = vmul.f32 %v784_v7, %v261_v22  ;;  %v836_v27 = vadd.f32 %v835_v24, %v834_v23  ;;  %v962_v22 = vpack.c.bf16 %v480_v19, %v479_v18  ;;  %v481_v23 = vld [vmem:[%s1414_s4 + $0x40] sm:$0xff]  ;;  %v482_v24 = vld [vmem:[%s1414_s4 + $0x48] sm:$0xff] }
 0x107   :  { %v299_v29 = vrot.slane %v292_v25, 1  ;;  %v307_v30 = vrot.slane %v292_v25, 2  ;;  %v289_v31 = vadd.f32 %v785_v10, %v278_v26  ;;  %v266_v32 = vadd.f32 %v874_v2, %v836_v27 }
 0x108   :  { %v1023_v2 = vmov 0.0|0.0  }
 0x109   :  { %v304_v34 = vmax.f32 %v292_v25, %v299_v29  ;;  %v293_v35 = vmax.f32 %v289_v31, 0.0  ;;  %v279_v36 = vmul.f32 %v784_v7, %v266_v32  ;;  %v300_v37 = vsel %vm297_vm1, %v298_v28, %v299_v29  ;;  %952 = vmatprep.subr.bf16.mxu1 %v1023_v2  ;;  %v476_v7 = vld [vmem:[%s1414_s4 + $0x18] sm:$0xff]  ;;  %s1028_s4 = smov 72  }
 0x10a   :  { %v303_v38 = vmax.f32 %v291_v20, %v300_v37  ;;  %v308_v39 = vsel %vm305_vm2, %v306_v33, %v307_v30  ;;  %954 = vmatpush3.bf16.msra.mxu1 %v953_v1  ;;  %v956_v8 = vpack.c.bf16 %v476_v7, %v475_v6  ;;  %v1027_v28 = vmov 0.0  }
 0x10b   :  { %v1243_v40 = vmax.f32 %v304_v34, %v307_v30  ;;  %v290_v41 = vadd.f32 %v785_v10, %v279_v36  ;;  %v378_v42 = vrot.slane %v293_v35, 1  ;;  %v387_v45 = vrot.slane %v293_v35, 2  ;;  %955 = vmatprep.subr.bf16.mxu1 %v1023_v2  ;;  %895 = vmatprep.mubr.msk.f32.mxu1 %vm1026_vm5, %v1027_v28 }
 0x10c   :  { %v1245_v43 = vmax.f32 %v303_v38, %v308_v39 }
 0x10d   :  { %v294_v44 = vmax.f32 %v290_v41, 0.0  ;;  %v340_v51 = vrot.slane %v1243_v40, 6  ;;  %v384_v52 = vmax.f32 %v292_v25, %v378_v42  ;;  %v333_v62 = vrot.slane %v1243_v40, 5 }
 0x10e   :  { %v326_v46 = vrot.slane %v1245_v43, 4  ;;  %v314_v47 = vrot.slane %v1245_v43, 1  ;;  %v339_v50 = vrot.slane %v1245_v43, 6  ;;  %v318_v56 = vrot.slane %v1245_v43, 2  ;;  %957 = vmatpush3.bf16.msra.mxu1 %v956_v8 }
 0x10f   :  { %v379_v48 = vrot.slane %v294_v44, 1  ;;  %v388_v49 = vrot.slane %v294_v44, 2  ;;  %v1256_v57 = vmax.f32 %v384_v52, %v387_v45  ;;  %v322_v60 = vrot.slane %v1245_v43, 3  ;;  %958 = vmatprep.subr.bf16.mxu1 %v1023_v2 }
 0x110   :  { %327 = vrot.lane.b32.xlu0 %v326_v46, %s1017_s0  ;;  %315 = vrot.lane.b32.xlu1 %v314_v47, %s1018_s2  ;;  %v341_v58 = vsel %vm338_vm3, %v339_v50, %v340_v51  ;;  %v332_v61 = vrot.slane %v1245_v43, 5  ;;  %v965_v25 = vpack.c.bf16 %v482_v24, %v481_v23  ;;  %v346_v31 = vrot.slane %v1245_v43, 7  ;;  %v787_v24 = vld [vmem:[%s1415_s5] ss:$0 sm:$0xff] }
 0x111   :  { %v380_v53 = vsel %vm297_vm1, %v378_v42, %v379_v48  ;;  %v389_v54 = vsel %vm305_vm2, %v387_v45, %v388_v49  ;;  %v386_v4 = vmax.f32 %v294_v44, %v379_v48  ;;  %v347_v32 = vrot.slane %v1243_v40, 7 }
 0x112   :  { %v385_v55 = vmax.f32 %v293_v35, %v380_v53  ;;  %v334_v5 = vsel %vm331_vm4, %v332_v61, %v333_v62  ;;  %960 = vmatpush3.bf16.msra.mxu1 %v959_v13  ;;  %v355_v34 = vrot.slane %v1243_v40, 1  ;;  %vm483_vm1 = vcmask 654336  }
 0x113   :  { %v395_v10 = vmax.f32 %v386_v4, %v388_v49  ;;  %961 = vmatprep.subr.bf16.mxu1 %v1023_v2  ;;  %v348_v33 = vsel %vm345_vm6, %v346_v31, %v347_v32  ;;  %v591_v31 = vld [vmem:[%s1417_s7] sm:$0xff]  ;;  %v592_v32 = vld [vmem:[%s1417_s7 + $0x8] sm:$0xff]  ;;  %vm764_vm2 = vcmask 9216  }
 0x114   :  { %v1259_v59 = vmax.f32 %v385_v55, %v389_v54  ;;  %342 = vrot.lane.b32.xlu0 %v341_v58, %s1019_s3  ;;  %319 = vrot.lane.b32.xlu1 %v318_v56, %s1020_s19 }
 0x115   :  { %v419_v21 = vrot.slane %v395_v10, 6  ;;  %v428_v27 = vrot.slane %v395_v10, 7  ;;  %v442_v29 = vrot.slane %v395_v10, 1 }
 0x116   :  { %v397_v3 = vrot.slane %v1259_v59, 1  ;;  %v401_v9 = vrot.slane %v1259_v59, 2  ;;  %v409_v14 = vrot.slane %v1259_v59, 4  ;;  %v405_v15 = vrot.slane %v1259_v59, 3  ;;  %963 = vmatpush3.bf16.msra.mxu1 %v962_v22 }
 0x117   :  { %v413_v16 = vrot.slane %v1259_v59, 5  ;;  %v427_v17 = vrot.slane %v1259_v59, 7  ;;  %v418_v20 = vrot.slane %v1259_v59, 6  ;;  %964 = vmatprep.subr.bf16.mxu1 %v1023_v2 }
 0x118   :  { %436 = vrot.lane.b32.xlu0 %v1259_v59, %s1021_s24  ;;  %323 = vrot.lane.b32.xlu1 %v322_v60, %s1022_s25 }
 0x119   :  { %v420_v26 = vsel %vm338_vm3, %v418_v20, %v419_v21  ;;  %v429_v30 = vsel %vm345_vm6, %v427_v17, %v428_v27 }
 0x11a   :  { %966 = vmatpush3.bf16.msra.mxu1 %v965_v25 }
 0x11b   :  { %967 = vmatprep.subr.bf16.mxu1 %v1023_v2 }
 0x11c   :  { %398 = vrot.lane.b32.xlu0 %v397_v3, %s1018_s2  ;;  %335 = vrot.lane.b32.xlu1 %v334_v5, %s1024_s29 }
 0x120   :  { %402 = vrot.lane.b32.xlu0 %v401_v9, %s1020_s19  ;;  %438 = vrot.lane.b32.xlu1 %v395_v10, %s1021_s24 }
 0x124   :  { %410 = vrot.lane.b32.xlu0 %v409_v14, %s1017_s0  ;;  %406 = vrot.lane.b32.xlu1 %v405_v15, %s1022_s25  ;;  %s1025_s0 = smov 56  }
 0x128   :  { %414 = vrot.lane.b32.xlu0 %v413_v16, %s1024_s29  ;;  %430 = vrot.lane.b32.xlu1 %v427_v17, %s1025_s0 }
 0x12c   :  { %421 = vrot.lane.b32.xlu0 %v418_v20, %s1019_s3  ;;  %423 = vrot.lane.b32.xlu1 %v420_v26, %s1019_s3  ;;  %v788_v26 = vld [vmem:[%s1416_s6] ss:$0 sm:$0xff] }
 0x130   :  { %432 = vrot.lane.b32.xlu0 %v429_v30, %s1025_s0  ;;  %443 = vrot.lane.b32.xlu1 %v442_v29, %s1028_s4 }
 0x134   :  { %349 = vrot.lane.b32.xlu0 %v348_v33, %s1025_s0  ;;  %352 = vrot.lane.b32.xlu1 %v1243_v40, %s1021_s24  ;;  %v968_v33 = vpack.c.bf16 %v592_v32, %v591_v31 }
 0x138   :  { %356 = vrot.lane.b32.xlu0 %v355_v34, %s1028_s4 }
 0x182   :  { %v328_v35 = vpop.permute.xlu0 %327  ;;  %v316_v36 = vpop.permute.xlu1 %315 }
 0x183   :  { %v360_v55 = vsel %vm359_vm7, %v1245_v43, %v316_v36 }
 0x186   :  { %v343_v37 = vpop.permute.xlu0 %342  ;;  %v320_v38 = vpop.permute.xlu1 %319 }
 0x187   :  { %v362_v58 = vsel %vm361_vm8, %v360_v55, %v320_v38 }
 0x18a   :  { %v437_v39 = vpop.permute.xlu0 %436  ;;  %v324_v41 = vpop.permute.xlu1 %323 }
 0x18e   :  { %v399_v42 = vpop.permute.xlu0 %398  ;;  %v336_v44 = vpop.permute.xlu1 %335 }
 0x18f   :  { %v446_v49 = vsel %vm359_vm7, %v1256_v57, %v399_v42  ;;  %v447_v53 = vsel %vm359_vm7, %v1259_v59, %v399_v42  ;;  %v363_v59 = vsel %vm86_vm0, %v362_v58, %v324_v41  ;;  %v674_v41 = vld [vmem:[%s1419_s9] sm:$0xff]  ;;  %v675_v42 = vld [vmem:[%s1419_s9 + $0x8] sm:$0xff] }
 0x190   :  { %v365_v3 = vsel %vm364_vm9, %v363_v59, %v328_v35 }
 0x191   :  { %v367_v7 = vsel %vm366_vm10, %v365_v3, %v336_v44 }
 0x192   :  { %v403_v45 = vpop.permute.xlu0 %402  ;;  %v439_v46 = vpop.permute.xlu1 %438  ;;  %v369_v14 = vsel %vm368_vm12, %v367_v7, %v343_v37 }
 0x193   :  { %v448_v40 = vsel %vm361_vm8, %v446_v49, %v403_v45  ;;  %v449_v54 = vsel %vm361_vm8, %v447_v53, %v403_v45  ;;  %v676_v49 = vld [vmem:[%s1419_s9 + $0x10] sm:$0xff] }
 0x196   :  { %v411_v47 = vpop.permute.xlu0 %410  ;;  %v407_v48 = vpop.permute.xlu1 %406 }
 0x197   :  { %v450_v50 = vsel %vm86_vm0, %v448_v40, %v407_v48  ;;  %v451_v56 = vsel %vm86_vm0, %v449_v54, %v407_v48  ;;  %vm471_vm0 = vcmask 1043456   ;;  %v677_v40 = vld [vmem:[%s1419_s9 + $0x18] sm:$0xff] }
 0x198   :  { %v452_v57 = vsel %vm364_vm9, %v450_v50, %v411_v47  ;;  %v453_v0 = vsel %vm364_vm9, %v451_v56, %v411_v47  ;;  %v971_v47 = vpack.c.bf16 %v675_v42, %v674_v41  ;;  %v974_v50 = vpack.c.bf16 %v677_v40, %v676_v49 }
 0x19a   :  { %v415_v51 = vpop.permute.xlu0 %414  ;;  %v431_v52 = vpop.permute.xlu1 %430 }
 0x19b   :  { %v454_v60 = vsel %vm366_vm10, %v452_v57, %v415_v51  ;;  %v455_v1 = vsel %vm366_vm10, %v453_v0, %v415_v51  ;;  %v789_v51 = vld [vmem:[%s1418_s8] ss:$0 sm:$0xff]  ;;  %s1029_s8 = smov [#allocation2]  }
 0x19c   :  { %s772_s9 = sshll.u32 %s1029_s8, 4  ;;  %s773_s9 = int_to_ptr.vmem [resolvable:$true] %s772_s9 }
 0x19d   :  { %s993_s18 = scalar_lea.vmem %s773_s9, 32  ;;  %p998_p1 = scmp.lt.s32.totalorder %s773_s9, %s773_s9 }
 0x19e   :  { %v422_v61 = vpop.permute.xlu0 %421  ;;  %v424_v62 = vpop.permute.xlu1 %423  ;;  %p994_p0 = scmp.ne.s32.totalorder %s773_s9, %s993_s18  ;;  %p999_p2 = scmp.lt.s32.totalorder %s993_s18, %s993_s18 }
 0x19f   :  { %v456_v63 = vsel %vm368_vm12, %v454_v60, %v422_v61  ;;  %v457_v4 = vsel %vm368_vm12, %v455_v1, %v424_v62 }
 0x1a0   :  { %v458_v43 = vsel %vm370_vm11, %v456_v63, %v431_v52  ;;  %p1000_p3 = por %p999_p2, %p998_p1 }
 0x1a1   :  { %v460_v9 = vsel %vm372_vm13, %v458_v43, %v437_v39 }
 0x1a2   :  { %v433_v5 = vpop.permute.xlu0 %432  ;;  %v444_v6 = vpop.permute.xlu1 %443  ;;  %p1001_p4 = pnand %p1000_p3, %p994_p0 }
 0x1a3   :  { %v459_v8 = vsel %vm370_vm11, %v457_v4, %v433_v5  ;;  %v462_v12 = vsel %vm374_vm14, %v460_v9, %v444_v6 }
 0x1a4   :  { %v461_v10 = vsel %vm372_vm13, %v459_v8, %v439_v46  ;;  %v467_v18 = vrot.slane %v462_v12, 3 }
 0x1a5   :  { %v463_v11 = vsel %vm374_vm14, %v461_v10, %v444_v6 }
 0x1a6   :  { %v350_v13 = vpop.permute.xlu0 %349  ;;  %v468_v15 = vrot.slane %v463_v11, 3  ;;  %v353_v17 = vpop.permute.xlu1 %352 }
 0x1a7   :  { %v371_v16 = vsel %vm370_vm11, %v369_v14, %v350_v13 }
 0x1a8   :  { %v373_v19 = vsel %vm372_vm13, %v371_v16, %v353_v17  ;;  %v469_v22 = vsel %vm466_vm15, %v467_v18, %v468_v15 }
 0x1aa   :  { %v357_v20 = vpop.permute.xlu0 %356 }
 0x1ab   :  { %v375_v21 = vsel %vm374_vm14, %v373_v19, %v357_v20 }
 0x1ac   :  { %v472_v23 = vsel %vm471_vm0, %v375_v21, %v469_v22 }
 0x1ad   :  { %896 = vmatmul.mubr.msk.f32.vlgmr.msra.gmra.mrb[4].mxu1 %vm483_vm1, %v472_v23 }
 0x1ae   :  { %902 = vmatprep.mubr.msk.f32.mxu1 %vm1026_vm5, %v1027_v28  ;;  %969 = vmatpush3.bf16.msra.mxu1 %v968_v33 }
 0x1af   :  { %970 = vmatprep.subr.bf16.mxu1 %v1023_v2 }
 0x280   :  { %v553_v25 = vpop.f32.mrb[4].mxu1 }
 0x281   :  { %v564_v27 = vmul.f32 %v787_v24, %v553_v25  ;;  %v897_v29 = vpop.f32.mrb[5].mxu1 }
 0x283   :  { %v572_v30 = vadd.f32 %v788_v26, %v564_v27 }
 0x285   :  { %v573_v34 = vmax.f32 %v572_v30, 0.0 }
 0x287   :  { %v575_v35 = vrot.slane %v573_v34, 1  ;;  %v578_v37 = vrot.slane %v573_v34, 2 }
 0x289   :  { %v577_v36 = vmax.f32 %v573_v34, %v575_v35 }
 0x28b   :  { %v580_v38 = vmax.f32 %v577_v36, %v578_v37 }
 0x28d   :  { %v582_v39 = vrot.slane %v580_v38, 1 }
 0x28f   :  { %583 = vrot.lane.b32.xlu1 %v582_v39, %s1018_s2 }
 0x301   :  { %v584_v44 = vpop.permute.xlu1 %583 }
 0x302   :  { %v586_v45 = vsel %vm359_vm7, %v580_v38, %v584_v44 }
 0x303   :  { %v588_v46 = vrot.slane %v586_v45, 3 }
 0x305   :  { %v590_v48 = vsel %vm345_vm6, %v586_v45, %v588_v46 }
 0x306   :  { %903 = vmatmul.mubr.msk.f32.vlgmr.msra.gmra.mrb[6].mxu1 %vm361_vm8, %v590_v48 }
 0x307   :  { %972 = vmatpush3.bf16.msra.mxu1 %v971_v47  ;;  %913 = vmatprep.mubr.msk.f32.mxu1 %vm1026_vm5, %v1027_v28 }
 0x308   :  { %973 = vmatprep.subr.bf16.mxu1 %v1023_v2  ;;  %v791_v2 = vld [vmem:[%s1420_s10] ss:$0 sm:$0xff] }
 0x30b   :  { %975 = vmatpush3.bf16.msra.mxu1 %v974_v50 }
 0x3d9   :  { %v669_v52 = vpop.f32.mrb[6].mxu1 }
 0x3da   :  { %v670_v53 = vadd.f32 %v789_v51, %v669_v52  ;;  %v904_v54 = vpop.f32.mrb[7].mxu1 }
 0x3dc   :  { %v673_v28 = vmax.f32 %v670_v53, 0.0 }
 0x3de   :  { %914 = vmatmul.mubr.msk.f32.vlgmr.msra.gmra.mrb[8].mxu1 %vm364_vm9, %v673_v28 }
 0x4b1   :  { %v754_v55 = vpop.f32.mrb[8].mxu1 }
 0x4b2   :  { %v755_v56 = vadd.f32 %v791_v2, %v754_v55  ;;  %v915_v57 = vpop.f32.mrb[9].mxu1 }
 0x4b4   :  { %v758_v58 = vsub.f32 0.0, %v755_v56 }
 0x4b6   :  { %v759_v60 = vmul.f32 1.442695, %v758_v58 }
 0x4b8   :  { %989 = vpow2.f32 %v759_v60 }
 0x4c2   :  { %v990_v61 = vpop.eup %989 }
 0x4c3   :  { %v761_v62 = vadd.f32 1.0, %v990_v61 }
 0x4c5   :  { %991 = vrcp.f32 %v761_v62 }
 0x4cf   :  { %v992_v59 = vpop.eup %991 }
 0x4d0   :  { %765 = vst.msk [vmem:[#allocation2] sm:$0x3] %vm764_vm2, %v992_v59 }
 0x4d1   :  { %1004 = shalt.err (!%p1001_p4)
}
 0x4d2   :  { %s1005_s19 = scalar_lea.hbm %s1421_s11, 32 }
 0x4d3   :  { %p1006_p5 = scmp.ne.s32.totalorder %s1421_s11, %s1005_s19  ;;  %p1009_p6 = scmp.lt.u32.totalorder %s1005_s19, %s1421_s11 }
 0x4d5   :  { %p1011_p7 = pnand %p1009_p6, %p1006_p5 }
 0x4d7   :  { %1014 = shalt.err (!%p1011_p7)
}
 0x4d8   :  { %775 = dma.vmem_to_hbm [thread:$0]  %s773_s9, 32, %s1421_s11, [#allocation3]  }
 0x4d9   :  { %1015 = dma.done.wait [#allocation3], 32  }
 0x4da   :  { %1016 = vsyncadd [#allocation3], 4294967264 }
 0x4db   :  { %779 = vsyncpa [#allocation3], 1 }

</bundles_post_ra>
